<compile_context>
chip_gen: v6e
topology: v6e:2x2x1
jax: 0.10.0
libtpu: 0.0.40
codegen_flags: <defaults>
</compile_context>

<pallas_src>
import functools
import math

import jax
import jax.numpy as jnp
from jax.experimental import pallas as pl
from jax.experimental.pallas import tpu as pltpu

_MIB = 1024 * 1024


def _round_up(x, m):
    return (x + m - 1) // m * m


# ---------------------------------------------------------------------------
# Kernel
# ---------------------------------------------------------------------------
def bert_lm_head_kernel(x_ref, w1_ref, b1_ref, g_ref, beta_ref, w2_ref, b2_ref,
                        o_ref, h_ref, *, eps):
    """One (tm, tv) output tile.  Grid = (row tiles, vocab tiles)."""
    # --- BertPredictionHeadTransform, computed once per row tile (j == 0), in f32 ---
    @pl.when(pl.program_id(1) == 0)
    def _():
        x = x_ref[...]                                                    # (tm, H) f32
        h = jnp.dot(x, w1_ref[...], preferred_element_type=jnp.float32)  # dense
        h = h + b1_ref[...]
        # exact (erf) gelu, matching transformers ACT2FN["gelu"]
        h = 0.5 * h * (1.0 + jax.lax.erf(h * (1.0 / math.sqrt(2.0))))
        # LayerNorm over the hidden dim
        mean = jnp.mean(h, axis=-1, keepdims=True)
        var = jnp.mean((h - mean) ** 2, axis=-1, keepdims=True)
        h = (h - mean) * jax.lax.rsqrt(var + eps)
        h = h * g_ref[...] + beta_ref[...]
        # Cast ONCE into the decoder matmul dtype; reused for every vocab tile.
        h_ref[...] = h.astype(h_ref.dtype)

    # --- decoder (Linear H -> current vocab tile, no bias) + shared bias ---
    out = jnp.dot(h_ref[...], w2_ref[...], preferred_element_type=jnp.float32)
    o_ref[...] = (out + b2_ref[...]).astype(o_ref.dtype)


# ---------------------------------------------------------------------------
# Per-generation tuning helpers
# ---------------------------------------------------------------------------
def _vmem_capacity_bytes():
    try:
        info = pltpu.get_tpu_info()
        for name in ("vmem_capacity_bytes", "vmem_size_bytes", "vmem_bytes"):
            v = getattr(info, name, None)
            if v:
                return int(v)
    except Exception:
        pass
    return 64 * _MIB  # conservative default (v7x per-TensorCore VMEM)


def _generation_defaults():
    """Return (default row tile, VMEM cap for the kernel)."""
    cap = _vmem_capacity_bytes()
    if cap <= 96 * _MIB:            # v7x: 64 MiB physical VMEM per TensorCore
        return 1024, 52 * _MIB
    return 2048, 100 * _MIB         # v5e / v6e: 128 MiB VMEM


def _block_spec(shape, index_map, n_buffers=None):
    """BlockSpec with an optional pipeline buffer-count hint (portable fallback)."""
    if n_buffers is not None and hasattr(pl, "Buffered"):
        try:
            return pl.BlockSpec(shape, index_map, pipeline_mode=pl.Buffered(n_buffers))
        except TypeError:
            pass
    return pl.BlockSpec(shape, index_map)


def _vmem_budget(tm, tv, H, w_bpe, h_bpe, out_bpe, dec_bufs):
    # Conservative: constant blocks counted double-buffered even when Buffered(1) is used.
    return (2 * tm * H * 4                      # x tiles (f32, double-buffered)
            + 2 * H * H * 4                     # dense weight (constant block)
            + dec_bufs * H * tv * w_bpe         # decoder weight tiles
            + 2 * tm * tv * out_bpe             # output tiles
            + tm * H * h_bpe                    # cached transform scratch
            + 8 * _round_up(H, 128) * 4         # dense bias + LN gamma/beta
            + 2 * _round_up(tv, 128) * 4)       # decoder bias tiles


# ---------------------------------------------------------------------------
# Parameter preparation (pad + cast ONCE, not per forward call)
# ---------------------------------------------------------------------------
def prepare_bert_lm_head_params(params, *, tv=2048, matmul_dtype=jnp.bfloat16):
    V = params["decoder_w"].shape[1]
    tv = _round_up(min(tv, _round_up(V, 128)), 128)
    V_pad = _round_up(V, tv)
    w2, b2 = params["decoder_w"], params["decoder_b"]
    if V_pad != V:
        w2 = jnp.pad(w2, ((0, 0), (0, V_pad - V)))
        b2 = jnp.pad(b2, ((0, 0), (0, V_pad - V)))
    return {
        "dense_w": params["dense_w"].astype(jnp.float32),
        "dense_b": params["dense_b"].astype(jnp.float32),
        "ln_gamma": params["ln_gamma"].astype(jnp.float32),
        "ln_beta": params["ln_beta"].astype(jnp.float32),
        "decoder_w": w2.astype(matmul_dtype),
        "decoder_b": b2.astype(jnp.float32),
        "vocab_size": V,
        "tv": tv,
    }


# ---------------------------------------------------------------------------
# Forward wrapper
# ---------------------------------------------------------------------------
def bert_lm_prediction_head(hidden_states, params, *, eps=1e-12, tm=None,
                            tv=2048, matmul_dtype=jnp.bfloat16,
                            out_dtype=jnp.float32):
    """hidden_states: (B, S, H).  Returns (B, S, V) logits in `out_dtype`.

    `params` may be raw (HF-style f32 weights) or pre-prepared via
    prepare_bert_lm_head_params (recommended for repeated calls).
    """
    B, S, H = hidden_states.shape
    M = B * S

    if "vocab_size" not in params:       # raw params -> pad/cast here (once per call)
        params = prepare_bert_lm_head_params(params, tv=tv, matmul_dtype=matmul_dtype)
    V = params["vocab_size"]
    tv = params["tv"]
    V_pad = params["decoder_w"].shape[1]
    w_dtype = params["decoder_w"].dtype
    w_bpe = jnp.dtype(w_dtype).itemsize
    out_bpe = jnp.dtype(out_dtype).itemsize

    tm_default, vmem_cap = _generation_defaults()
    if tm is None:
        tm = tm_default
    tm = _round_up(min(tm, _round_up(M, 8)), 8)

    use_buffered = hasattr(pl, "Buffered")
    dec_bufs = 3 if use_buffered else 2   # 3rd buffer hides the longer j==0 iteration

    # Shrink the row tile until the working set fits the per-generation VMEM cap.
    while tm > 256 and _vmem_budget(tm, tv, H, w_bpe, w_bpe, out_bpe, dec_bufs) > vmem_cap:
        tm = _round_up(tm // 2, 8)
    budget = _vmem_budget(tm, tv, H, w_bpe, w_bpe, out_bpe, dec_bufs)
    vmem_limit = int(min(vmem_cap, max(int(budget * 1.25), 32 * _MIB)))

    M_pad = _round_up(M, tm)
    x2d = hidden_states.reshape(M, H).astype(jnp.float32)
    if M_pad != M:
        # zero-padded rows stay finite through gelu/LayerNorm and are cropped below
        x2d = jnp.pad(x2d, ((0, M_pad - M), (0, 0)))

    kernel = functools.partial(bert_lm_head_kernel, eps=eps)

    def build_call(buffered):
        in_specs = [
            pl.BlockSpec((tm, H), lambda i, j: (i, 0)),                         # x tile
            _block_spec((H, H), lambda i, j: (0, 0), 1 if buffered else None),  # dense W
            _block_spec((1, H), lambda i, j: (0, 0), 1 if buffered else None),  # dense b
            _block_spec((1, H), lambda i, j: (0, 0), 1 if buffered else None),  # LN gamma
            _block_spec((1, H), lambda i, j: (0, 0), 1 if buffered else None),  # LN beta
            _block_spec((H, tv), lambda i, j: (0, j), 3 if buffered else None), # dec W tile
            pl.BlockSpec((1, tv), lambda i, j: (0, j)),                         # dec bias
        ]
        return pl.pallas_call(
            kernel,
            out_shape=jax.ShapeDtypeStruct((M_pad, V_pad), out_dtype),
            grid_spec=pltpu.PrefetchScalarGridSpec(
                num_scalar_prefetch=0,
                grid=(M_pad // tm, V_pad // tv),
                in_specs=in_specs,
                out_specs=pl.BlockSpec((tm, tv), lambda i, j: (i, j)),
                scratch_shapes=[pltpu.VMEM((tm, H), w_dtype)],   # cached transform
            ),
            compiler_params=pltpu.CompilerParams(
                dimension_semantics=("parallel", "arbitrary"),
                vmem_limit_bytes=vmem_limit),
        )

    args = (x2d, params["dense_w"], params["dense_b"], params["ln_gamma"],
            params["ln_beta"], params["decoder_w"], params["decoder_b"])
    try:
        out2d = build_call(use_buffered)(*args)
    except Exception:
        if not use_buffered:
            raise
        out2d = build_call(False)(*args)   # portability fallback: no Buffered hints

    return out2d[:M, :V].reshape(B, S, V)


# ---------------------------------------------------------------------------
# Pure-JAX reference + test
# ---------------------------------------------------------------------------
def reference(hidden_states, params, eps=1e-12):
    h = hidden_states @ params["dense_w"] + params["dense_b"][0]
    h = 0.5 * h * (1.0 + jax.lax.erf(h / math.sqrt(2.0)))
    mean = jnp.mean(h, axis=-1, keepdims=True)
    var = jnp.mean((h - mean) ** 2, axis=-1, keepdims=True)
    h = (h - mean) / jnp.sqrt(var + eps)
    h = h * params["ln_gamma"][0] + params["ln_beta"][0]
    return h @ params["decoder_w"] + params["decoder_b"][0]


def _make_params(key, H, V):
    kw1, kb1, kw2 = jax.random.split(key, 3)
    return {
        "dense_w":   jax.random.normal(kw1, (H, H), dtype=jnp.float32) * 0.02,
        "dense_b":   jax.random.normal(kb1, (1, H), dtype=jnp.float32) * 0.02,
        "ln_gamma":  jnp.ones((1, H), dtype=jnp.float32),
        "ln_beta":   jnp.zeros((1, H), dtype=jnp.float32),
        "decoder_w": jax.random.normal(kw2, (H, V), dtype=jnp.float32) * 0.02,
        "decoder_b": jnp.zeros((1, V), dtype=jnp.float32),  # self.bias init: zeros
    }


if __name__ == "__main__":
    eps = 1e-12
    key = jax.random.PRNGKey(0)
    k1, k2, k3, k4 = jax.random.split(key, 4)

    # 1) small BERT-like config, default path: bf16 decoder matmul, f32 transform/logits
    B, S, H, V = 2, 8, 128, 256
    x = jax.random.normal(k1, (B, S, H), dtype=jnp.float32)
    params = _make_params(k2, H, V)
    ref = reference(x, params, eps=eps)

    out = jax.block_until_ready(bert_lm_prediction_head(x, params, eps=eps))
    assert out.shape == (B, S, V)
    assert jnp.allclose(out, ref, atol=3e-2, rtol=3e-2), "mismatch (bf16 decoder path)"

    # 2) pre-prepared (padded + pre-cast) params — the recommended steady-state path
    prepared = prepare_bert_lm_head_params(params)
    out_p = jax.block_until_ready(bert_lm_prediction_head(x, prepared, eps=eps))
    assert jnp.allclose(out_p, out, atol=1e-6, rtol=1e-6), "prepared-params path differs"

    # 3) full-f32 decoder path (exactness check against the pure-JAX reference)
    out_f32 = jax.block_until_ready(
        bert_lm_prediction_head(x, params, eps=eps, matmul_dtype=jnp.float32))
    assert jnp.allclose(out_f32, ref, atol=1e-4, rtol=1e-4), "mismatch (f32 path)"

    # 4) multi-tile 2-D grid + row/vocab padding (M=10 pads to 16, V=200 pads to 256)
    B2, S2, H2, V2 = 2, 5, 128, 200
    x2 = jax.random.normal(k3, (B2, S2, H2), dtype=jnp.float32)
    params2 = _make_params(k4, H2, V2)
    out2 = jax.block_until_ready(
        bert_lm_prediction_head(x2, params2, eps=eps, tm=8, tv=128,
                                matmul_dtype=jnp.float32))
    ref2 = reference(x2, params2, eps=eps)
    assert out2.shape == (B2, S2, V2)
    assert jnp.allclose(out2, ref2, atol=1e-4, rtol=1e-4), "mismatch (padded/tiled path)"

    # 5) bf16 logits output (halves the M*V writeback when downstream tolerates it)
    out_bf16 = jax.block_until_ready(
        bert_lm_prediction_head(x, params, eps=eps, out_dtype=jnp.bfloat16))
    assert out_bf16.dtype == jnp.bfloat16
    assert jnp.allclose(out_bf16.astype(jnp.float32), ref, atol=5e-2, rtol=5e-2), \
        "mismatch (bf16 logits)"

    print("KERNEL_OK")
</pallas_src>

<mosaic_0001>
module attributes {stable_mosaic.version = 11 : i64} {
  func.func @bert_lm_head_kernel(%arg0: i32, %arg1: i32, %arg2: memref<16x128xf32, #tpu.memory_space<vmem>>, %arg3: memref<128x128xf32, #tpu.memory_space<vmem>>, %arg4: memref<1x128xf32, #tpu.memory_space<vmem>>, %arg5: memref<1x128xf32, #tpu.memory_space<vmem>>, %arg6: memref<1x128xf32, #tpu.memory_space<vmem>>, %arg7: memref<128x256xbf16, #tpu.memory_space<vmem>>, %arg8: memref<1x256xf32, #tpu.memory_space<vmem>>, %arg9: memref<16x256xf32, #tpu.memory_space<vmem>>, %arg10: memref<16x128xbf16, #tpu.memory_space<vmem>>) attributes {dimension_semantics = [#tpu.dimension_semantics<parallel>, #tpu.dimension_semantics<arbitrary>], iteration_bounds = array<i64: 1, 1>, scalar_prefetch = 0 : i64, scratch_operands = 1 : i64, tpu.core_type = #tpu.core_type<tc>, window_params = [{transform_indices = @transform_0, window_bounds = array<i64: 16, 128>}, {pipeline_mode = #tpu.pipeline_mode<synchronous>, transform_indices = @transform_1, window_bounds = array<i64: 128, 128>}, {pipeline_mode = #tpu.pipeline_mode<synchronous>, transform_indices = @transform_2, window_bounds = array<i64: 1, 128>}, {pipeline_mode = #tpu.pipeline_mode<synchronous>, transform_indices = @transform_3, window_bounds = array<i64: 1, 128>}, {pipeline_mode = #tpu.pipeline_mode<synchronous>, transform_indices = @transform_4, window_bounds = array<i64: 1, 128>}, {transform_indices = @transform_5, window_bounds = array<i64: 128, 256>}, {transform_indices = @transform_6, window_bounds = array<i64: 1, 256>}, {transform_indices = @transform_7, window_bounds = array<i64: 16, 256>}]} {
    %c0_i32 = arith.constant 0 : i32
    %0 = arith.cmpi eq, %arg1, %c0_i32 : i32
    %1 = arith.extui %0 : i1 to i32
    %c0_i32_0 = arith.constant 0 : i32
    %2 = arith.cmpi ne, %1, %c0_i32_0 : i32
    scf.if %2 {
      %c0_8 = arith.constant 0 : index
      %c0_9 = arith.constant 0 : index
      %10 = vector.load %arg2[%c0_8, %c0_9] : memref<16x128xf32, #tpu.memory_space<vmem>>, vector<16x128xf32>
      %c0_10 = arith.constant 0 : index
      %c0_11 = arith.constant 0 : index
      %11 = vector.load %arg3[%c0_10, %c0_11] : memref<128x128xf32, #tpu.memory_space<vmem>>, vector<128x128xf32>
      %cst_12 = arith.constant dense<0.000000e+00> : vector<16x128xf32>
      %12 = tpu.matmul %10, %11, %cst_12 {dimension_numbers = #tpu.dot_dimension_numbers<[1], [0], [0], [1], [0, 0, 1, 1], [], []>} : vector<16x128xf32>, vector<128x128xf32>, vector<16x128xf32> -> vector<16x128xf32>
      %c0_13 = arith.constant 0 : index
      %c0_14 = arith.constant 0 : index
      %13 = vector.load %arg4[%c0_13, %c0_14] : memref<1x128xf32, #tpu.memory_space<vmem>>, vector<1x128xf32>
      %14 = vector.broadcast %13 : vector<1x128xf32> to vector<16x128xf32>
      %15 = arith.addf %12, %14 : vector<16x128xf32>
      %cst_15 = arith.constant 5.000000e-01 : f32
      %16 = vector.broadcast %cst_15 : f32 to vector<16x128xf32>
      %17 = arith.mulf %16, %15 : vector<16x128xf32>
      %cst_16 = arith.constant 0.707106769 : f32
      %18 = vector.broadcast %cst_16 : f32 to vector<16x128xf32>
      %19 = arith.mulf %15, %18 : vector<16x128xf32>
      %20 = math.erf %19 : vector<16x128xf32>
      %cst_17 = arith.constant 1.000000e+00 : f32
      %21 = vector.broadcast %cst_17 : f32 to vector<16x128xf32>
      %22 = arith.addf %21, %20 : vector<16x128xf32>
      %23 = arith.mulf %17, %22 : vector<16x128xf32>
      %cst_18 = arith.constant dense<0.000000e+00> : vector<16xf32>
      %24 = vector.multi_reduction <add>, %23, %cst_18 [1] : vector<16x128xf32> to vector<16xf32>
      %25 = vector.shape_cast %24 : vector<16xf32> to vector<16x1xf32>
      %cst_19 = arith.constant 1.280000e+02 : f32
      %26 = vector.broadcast %cst_19 : f32 to vector<16x1xf32>
      %27 = arith.divf %25, %26 : vector<16x1xf32>
      %28 = vector.broadcast %27 : vector<16x1xf32> to vector<16x128xf32>
      %29 = arith.subf %23, %28 : vector<16x128xf32>
      %30 = arith.mulf %29, %29 : vector<16x128xf32>
      %cst_20 = arith.constant dense<0.000000e+00> : vector<16xf32>
      %31 = vector.multi_reduction <add>, %30, %cst_20 [1] : vector<16x128xf32> to vector<16xf32>
      %32 = vector.shape_cast %31 : vector<16xf32> to vector<16x1xf32>
      %cst_21 = arith.constant 1.280000e+02 : f32
      %33 = vector.broadcast %cst_21 : f32 to vector<16x1xf32>
      %34 = arith.divf %32, %33 : vector<16x1xf32>
      %35 = vector.broadcast %27 : vector<16x1xf32> to vector<16x128xf32>
      %36 = arith.subf %23, %35 : vector<16x128xf32>
      %cst_22 = arith.constant 9.99999996E-13 : f32
      %37 = vector.broadcast %cst_22 : f32 to vector<16x1xf32>
      %38 = arith.addf %34, %37 : vector<16x1xf32>
      %39 = math.rsqrt %38 : vector<16x1xf32>
      %40 = vector.broadcast %39 : vector<16x1xf32> to vector<16x128xf32>
      %41 = arith.mulf %36, %40 : vector<16x128xf32>
      %c0_23 = arith.constant 0 : index
      %c0_24 = arith.constant 0 : index
      %42 = vector.load %arg5[%c0_23, %c0_24] : memref<1x128xf32, #tpu.memory_space<vmem>>, vector<1x128xf32>
      %43 = vector.broadcast %42 : vector<1x128xf32> to vector<16x128xf32>
      %44 = arith.mulf %41, %43 : vector<16x128xf32>
      %c0_25 = arith.constant 0 : index
      %c0_26 = arith.constant 0 : index
      %45 = vector.load %arg6[%c0_25, %c0_26] : memref<1x128xf32, #tpu.memory_space<vmem>>, vector<1x128xf32>
      %46 = vector.broadcast %45 : vector<1x128xf32> to vector<16x128xf32>
      %47 = arith.addf %44, %46 : vector<16x128xf32>
      %48 = arith.truncf %47 : vector<16x128xf32> to vector<16x128xbf16>
      %c0_27 = arith.constant 0 : index
      %c0_28 = arith.constant 0 : index
      %49 = vector.load %arg10[%c0_27, %c0_28] : memref<16x128xbf16, #tpu.memory_space<vmem>>, vector<16x128xbf16>
      tpu.vector_store %arg10[%c0_27, %c0_28], %48 {strides = array<i32>} : memref<16x128xbf16, #tpu.memory_space<vmem>>, vector<16x128xbf16>,
    } else {
    }
    %c0 = arith.constant 0 : index
    %c0_1 = arith.constant 0 : index
    %3 = vector.load %arg10[%c0, %c0_1] : memref<16x128xbf16, #tpu.memory_space<vmem>>, vector<16x128xbf16>
    %c0_2 = arith.constant 0 : index
    %c0_3 = arith.constant 0 : index
    %4 = vector.load %arg7[%c0_2, %c0_3] : memref<128x256xbf16, #tpu.memory_space<vmem>>, vector<128x256xbf16>
    %cst = arith.constant dense<0.000000e+00> : vector<16x256xf32>
    %5 = tpu.matmul %3, %4, %cst {dimension_numbers = #tpu.dot_dimension_numbers<[1], [0], [0], [1], [0, 0, 1, 1], [], []>} : vector<16x128xbf16>, vector<128x256xbf16>, vector<16x256xf32> -> vector<16x256xf32>
    %c0_4 = arith.constant 0 : index
    %c0_5 = arith.constant 0 : index
    %6 = vector.load %arg8[%c0_4, %c0_5] : memref<1x256xf32, #tpu.memory_space<vmem>>, vector<1x256xf32>
    %7 = vector.broadcast %6 : vector<1x256xf32> to vector<16x256xf32>
    %8 = arith.addf %5, %7 : vector<16x256xf32>
    %c0_6 = arith.constant 0 : index
    %c0_7 = arith.constant 0 : index
    %9 = vector.load %arg9[%c0_6, %c0_7] : memref<16x256xf32, #tpu.memory_space<vmem>>, vector<16x256xf32>
    tpu.vector_store %arg9[%c0_6, %c0_7], %8 {strides = array<i32>} : memref<16x256xf32, #tpu.memory_space<vmem>>, vector<16x256xf32>,
    return
  }
  func.func @transform_0(%arg0: i32, %arg1: i32) -> (i32, i32) {
    %c0_i32 = arith.constant 0 : i32
    %c0_i32_0 = arith.constant 0 : i32
    return %arg0, %c0_i32 : i32, i32
  }
  func.func @transform_1(%arg0: i32, %arg1: i32) -> (i32, i32) {
    %c0_i32 = arith.constant 0 : i32
    %c0_i32_0 = arith.constant 0 : i32
    %c0_i32_1 = arith.constant 0 : i32
    return %c0_i32, %c0_i32_0 : i32, i32
  }
  func.func @transform_2(%arg0: i32, %arg1: i32) -> (i32, i32) {
    %c0_i32 = arith.constant 0 : i32
    %c0_i32_0 = arith.constant 0 : i32
    %c0_i32_1 = arith.constant 0 : i32
    return %c0_i32, %c0_i32_0 : i32, i32
  }
  func.func @transform_3(%arg0: i32, %arg1: i32) -> (i32, i32) {
    %c0_i32 = arith.constant 0 : i32
    %c0_i32_0 = arith.constant 0 : i32
    %c0_i32_1 = arith.constant 0 : i32
    return %c0_i32, %c0_i32_0 : i32, i32
  }
  func.func @transform_4(%arg0: i32, %arg1: i32) -> (i32, i32) {
    %c0_i32 = arith.constant 0 : i32
    %c0_i32_0 = arith.constant 0 : i32
    %c0_i32_1 = arith.constant 0 : i32
    return %c0_i32, %c0_i32_0 : i32, i32
  }
  func.func @transform_5(%arg0: i32, %arg1: i32) -> (i32, i32) {
    %c0_i32 = arith.constant 0 : i32
    %c0_i32_0 = arith.constant 0 : i32
    return %c0_i32, %arg1 : i32, i32
  }
  func.func @transform_6(%arg0: i32, %arg1: i32) -> (i32, i32) {
    %c0_i32 = arith.constant 0 : i32
    %c0_i32_0 = arith.constant 0 : i32
    return %c0_i32, %arg1 : i32, i32
  }
  func.func @transform_7(%arg0: i32, %arg1: i32) -> (i32, i32) {
    %c0_i32 = arith.constant 0 : i32
    return %arg0, %arg1 : i32, i32
  }
}

</mosaic_0001>

<bundles_post_ra>
// kernel: tpu_custom_call.1
= control target key start
LH: loop header
LB: loop body
LE: loop exit
PB: predicated region body
PF: predicated region fallthrough
CT: control target
= control target key end

     0   :  { %12 = vsyncpa [#allocation4], 0  ;;  %s698_s0 = inlined_call_operand.hbm [shape: f32[16,128], index: 0, kind: input, shape index: {}]   ;;  %s699_s1 = inlined_call_operand.hbm [shape: f32[128,128], index: 1, kind: input, shape index: {}]   ;;  %s700_s2 = inlined_call_operand.vmem [shape: f32[1,128], index: 2, kind: input, shape index: {}]   ;;  %s701_s3 = inlined_call_operand.vmem [shape: f32[1,128], index: 3, kind: input, shape index: {}]   ;;  %s702_s4 = inlined_call_operand.vmem [shape: f32[1,128], index: 4, kind: input, shape index: {}]   ;;  %s703_s5 = inlined_call_operand.hbm [shape: bf16[128,256], index: 5, kind: input, shape index: {}]   ;;  %s704_s6 = inlined_call_operand.vmem [shape: f32[1,256], index: 6, kind: input, shape index: {}]   ;;  %s705_s7 = inlined_call_operand.hbm [shape: f32[16,256], index: 7, kind: output, shape index: {}]  }
   0x1   :  { %13 = vsyncpa [#allocation7], 0 }
   0x2   :  { %14 = vsyncpa [#allocation5], 0  ;;  %s625_s24 = smov [#allocation6]   ;;  %s626_s26 = smov [#allocation3]  }
   0x3   :  { %s32_s25 = sshll.u32 %s625_s24, 4  ;;  %s20_s27 = sshll.u32 %s626_s26, 4  ;;  %s33_s25 = int_to_ptr.vmem [resolvable:$true] %s32_s25  ;;  %s21_s27 = int_to_ptr.vmem [resolvable:$true] %s20_s27 }
   0x4   :  { %s547_s28 = scalar_lea.vmem %s33_s25, 2048  ;;  %p552_p1 = scmp.lt.s32.totalorder %s33_s25, %s33_s25 }
   0x5   :  { %p548_p0 = scmp.ne.s32.totalorder %s33_s25, %s547_s28  ;;  %p553_p2 = scmp.lt.s32.totalorder %s547_s28, %s547_s28 }
   0x7   :  { %p554_p3 = por %p553_p2, %p552_p1 }
   0x9   :  { %p555_p4 = pnand %p554_p3, %p548_p0 }
   0xb   :  { %558 = shalt.err (!%p555_p4)
}
   0xc   :  { %s627_s29 = smov 128   ;;  %s628_s30 = smov 8  }
   0xd   :  { %38 = dma.hbm_to_vmem [thread:$0]  %s699_s1, 2048, %s33_s25, [#allocation7], %s627_s29, %s627_s29, %s628_s30  }
   0xe   :  { %s567_s10 = scalar_lea.vmem %s21_s27, 256  ;;  %p572_p6 = scmp.lt.s32.totalorder %s21_s27, %s21_s27 }
   0xf   :  { %p568_p5 = scmp.ne.s32.totalorder %s21_s27, %s567_s10  ;;  %p573_p7 = scmp.lt.s32.totalorder %s567_s10, %s567_s10 }
  0x11   :  { %p574_p8 = por %p573_p7, %p572_p6 }
  0x13   :  { %p575_p9 = pnand %p574_p8, %p568_p5 }
  0x15   :  { %578 = shalt.err (!%p575_p9)
}
  0x16   :  { %26 = dma.hbm_to_vmem [thread:$0]  %s698_s0, 256, %s21_s27, [#allocation4], %s627_s29, %s627_s29, %s628_s30  }
  0x17   :  { %s629_s13 = smov [#allocation8]  }
  0x18   :  { %s50_s14 = sshll.u32 %s629_s13, 4  ;;  %s51_s14 = int_to_ptr.vmem [resolvable:$true] %s50_s14 }
  0x19   :  { %s587_s15 = scalar_lea.vmem %s51_s14, 2048  ;;  %p592_p11 = scmp.lt.s32.totalorder %s51_s14, %s51_s14 }
  0x1a   :  { %p588_p10 = scmp.ne.s32.totalorder %s51_s14, %s587_s15  ;;  %p593_p12 = scmp.lt.s32.totalorder %s587_s15, %s587_s15 }
  0x1c   :  { %p594_p13 = por %p593_p12, %p592_p11 }
  0x1e   :  { %p595_p0 = pnand %p594_p13, %p588_p10 }
  0x20   :  { %598 = shalt.err (!%p595_p0)
}
  0x21   :  { %56 = dma.hbm_to_vmem [thread:$0]  %s703_s5, 2048, %s51_s14, [#allocation7], %s627_s29, %s627_s29, %s628_s30  }
  0x22   :  { %619 = dma.done.wait [#allocation4], 256  }
  0x23   :  { %620 = vsyncadd [#allocation4], 4294967040 }
  0x24   :  { %621 = dma.done.wait [#allocation7], 4096  }
  0x25   :  { %622 = vsyncadd [#allocation7], 4294963200  ;;  %v90_v0 = vld [vmem:[#allocation6 + $0x78] sm:$0xff]  ;;  %v89_v1 = vld [vmem:[#allocation6 + $0x70] sm:$0xff]  ;;  %v630_v57 = vmov 0  }
  0x26   :  { %462 = vmatprep.subr.mxu0 %v90_v0  ;;  %v88_v2 = vld [vmem:[#allocation6 + $0x68] sm:$0xff]  ;;  %v87_v3 = vld [vmem:[#allocation6 + $0x60] sm:$0xff]  ;;  %v86_v4 = vld [vmem:[#allocation6 + $0x58] sm:$0xff]  ;;  %382 = vmatprep.mubr.bf16.mxu1 %v630_v57 }
  0x27   :  { %463 = vmatpush3.msra.mxu0 %v90_v0  ;;  %v73_v5 = vld [vmem:[#allocation3] sm:$0xff]  ;;  %v84_v7 = vld [vmem:[#allocation6 + $0x48] sm:$0xff]  ;;  %v83_v8 = vld [vmem:[#allocation6 + $0x40] sm:$0xff] }
  0x28   :  { %464 = vmatprep.subr.mxu0 %v89_v1  ;;  %v85_v6 = vld [vmem:[#allocation6 + $0x50] sm:$0xff]  ;;  %494 = vmatprep.mubr.f32.mxu0 %v73_v5  ;;  %v82_v9 = vld [vmem:[#allocation6 + $0x38] sm:$0xff]  ;;  %v80_v11 = vld [vmem:[#allocation6 + $0x28] sm:$0xff] }
  0x29   :  { %465 = vmatpush3.msra.mxu0 %v89_v1  ;;  %v81_v10 = vld [vmem:[#allocation6 + $0x30] sm:$0xff]  ;;  %v79_v12 = vld [vmem:[#allocation6 + $0x20] sm:$0xff]  ;;  %v78_v13 = vld [vmem:[#allocation6 + $0x18] sm:$0xff] }
  0x2a   :  { %466 = vmatprep.subr.mxu0 %v88_v2  ;;  %v77_v14 = vld [vmem:[#allocation6 + $0x10] sm:$0xff]  ;;  %v76_v15 = vld [vmem:[#allocation6 + $0x8] sm:$0xff]  ;;  %v75_v16 = vld [vmem:[#allocation6] sm:$0xff] }
  0x2b   :  { %467 = vmatpush3.msra.mxu0 %v88_v2  ;;  %v74_v17 = vld [vmem:[#allocation3 + $0x8] sm:$0xff]  ;;  %v415_v18 = vld [vmem:[%s700_s2] ss:$0 sm:$0xff]  ;;  %v509_v43 = vld [vmem:[#allocation8 + $0x64] ss:$8 sps:$4 sm:$0xff]  }
  0x2c   :  { %468 = vmatprep.subr.mxu0 %v87_v3  ;;  %v506_v41 = vld [vmem:[#allocation8 + $0x74] ss:$8 sps:$4 sm:$0xff]   ;;  %v508_v42 = vld [vmem:[#allocation8 + $0x70] ss:$8 sps:$4 sm:$0xff]   ;;  %v511_v44 = vld [vmem:[#allocation8 + $0x60] ss:$8 sps:$4 sm:$0xff]  }
  0x2d   :  { %469 = vmatpush3.msra.mxu0 %v87_v3  ;;  %350 = vmatprep.subr.bf16.mxu1 %v506_v41  ;;  %v512_v45 = vld [vmem:[#allocation8 + $0x54] ss:$8 sps:$4 sm:$0xff]   ;;  %v514_v46 = vld [vmem:[#allocation8 + $0x50] ss:$8 sps:$4 sm:$0xff]   ;;  %v515_v47 = vld [vmem:[#allocation8 + $0x44] ss:$8 sps:$4 sm:$0xff]  }
  0x2e   :  { %470 = vmatprep.subr.mxu0 %v86_v4  ;;  %351 = vmatpush1.bf16.msra.mxu1 %v508_v42  ;;  %v517_v48 = vld [vmem:[#allocation8 + $0x40] ss:$8 sps:$4 sm:$0xff]   ;;  %v518_v49 = vld [vmem:[#allocation8 + $0x34] ss:$8 sps:$4 sm:$0xff]   ;;  %v520_v50 = vld [vmem:[#allocation8 + $0x30] ss:$8 sps:$4 sm:$0xff]  }
  0x2f   :  { %471 = vmatpush3.msra.mxu0 %v86_v4  ;;  %352 = vmatprep.subr.bf16.mxu1 %v509_v43  ;;  %v521_v51 = vld [vmem:[#allocation8 + $0x24] ss:$8 sps:$4 sm:$0xff]   ;;  %v523_v52 = vld [vmem:[#allocation8 + $0x20] ss:$8 sps:$4 sm:$0xff]   ;;  %v524_v53 = vld [vmem:[#allocation8 + $0x14] ss:$8 sps:$4 sm:$0xff]  }
  0x30   :  { %472 = vmatprep.subr.mxu0 %v85_v6  ;;  %v526_v54 = vld [vmem:[#allocation8 + $0x10] ss:$8 sps:$4 sm:$0xff]   ;;  %v527_v55 = vld [vmem:[#allocation8 + $0x4] ss:$8 sps:$4 sm:$0xff]   ;;  %v529_v56 = vld [vmem:[#allocation8] ss:$8 sps:$4 sm:$0xff]  }
  0x31   :  { %473 = vmatpush3.msra.mxu0 %v85_v6  ;;  %v416_v2 = vld [vmem:[%s701_s3] ss:$0 sm:$0xff]  ;;  %s631_s3 = smov [#allocation9]  }
  0x32   :  { %474 = vmatprep.subr.mxu0 %v84_v7  ;;  %353 = vmatpush1.bf16.msra.mxu1 %v511_v44  ;;  %v417_v6 = vld [vmem:[%s702_s4] ss:$0 sm:$0xff]  ;;  %s402_s4 = sshll.u32 %s631_s3, 4  ;;  %s403_s4 = int_to_ptr.vmem [resolvable:$true] %s402_s4 }
  0x33   :  { %475 = vmatpush3.msra.mxu0 %v84_v7  ;;  %354 = vmatprep.subr.bf16.mxu1 %v512_v45  ;;  %s599_s22 = scalar_lea.vmem %s403_s4, 512  ;;  %p604_p2 = scmp.lt.s32.totalorder %s403_s4, %s403_s4 }
  0x34   :  { %476 = vmatprep.subr.mxu0 %v83_v8  ;;  %p600_p1 = scmp.ne.s32.totalorder %s403_s4, %s599_s22  ;;  %p605_p3 = scmp.lt.s32.totalorder %s599_s22, %s599_s22 }
  0x35   :  { %477 = vmatpush3.msra.mxu0 %v83_v8 }
  0x36   :  { %478 = vmatprep.subr.mxu0 %v82_v9  ;;  %355 = vmatpush1.bf16.msra.mxu1 %v514_v46  ;;  %p606_p4 = por %p605_p3, %p604_p2 }
  0x37   :  { %479 = vmatpush3.msra.mxu0 %v82_v9  ;;  %356 = vmatprep.subr.bf16.mxu1 %v515_v47 }
  0x38   :  { %480 = vmatprep.subr.mxu0 %v81_v10  ;;  %p607_p5 = pnand %p606_p4, %p600_p1 }
  0x39   :  { %481 = vmatpush3.msra.mxu0 %v81_v10 }
  0x3a   :  { %482 = vmatprep.subr.mxu0 %v80_v11  ;;  %357 = vmatpush1.bf16.msra.mxu1 %v517_v48 }
  0x3b   :  { %483 = vmatpush3.msra.mxu0 %v80_v11  ;;  %358 = vmatprep.subr.bf16.mxu1 %v518_v49 }
  0x3c   :  { %484 = vmatprep.subr.mxu0 %v79_v12 }
  0x3d   :  { %485 = vmatpush3.msra.mxu0 %v79_v12  ;;  %v254_v12 = vlaneseq }
  0x3e   :  { %486 = vmatprep.subr.mxu0 %v78_v13  ;;  %359 = vmatpush1.bf16.msra.mxu1 %v520_v50 }
  0x3f   :  { %487 = vmatpush3.msra.mxu0 %v78_v13  ;;  %360 = vmatprep.subr.bf16.mxu1 %v521_v51  ;;  %v255_v13 = vshrl.u32 %v254_v12, 7 }
  0x40   :  { %488 = vmatprep.subr.mxu0 %v77_v14 }
  0x41   :  { %489 = vmatpush3.msra.mxu0 %v77_v14  ;;  %v256_v14 = vsub.s32 0, %v255_v13 }
  0x42   :  { %490 = vmatprep.subr.mxu0 %v76_v15  ;;  %361 = vmatpush1.bf16.msra.mxu1 %v523_v52 }
  0x43   :  { %491 = vmatpush3.msra.mxu0 %v76_v15  ;;  %362 = vmatprep.subr.bf16.mxu1 %v524_v53  ;;  %v252_v15 = vld [vmem:[%s704_s6] sm:$0x3] }
  0x44   :  { %492 = vmatprep.subr.mxu0 %v75_v16 }
  0x45   :  { %493 = vmatpush3.msra.mxu0 %v75_v16  ;;  %v260_v16 = vsub.s32 1, %v255_v13 }
  0x46   :  { %495 = vmatmul.mubr.f32.vlgmr.msra.gmra.mxu0 %v74_v17  ;;  %363 = vmatpush1.bf16.msra.mxu1 %v526_v54  ;;  %v257_v17 = vrot.slane %v252_v15, %v256_v14 }
  0x47   :  { %364 = vmatprep.subr.bf16.mxu1 %v527_v55 }
  0x4a   :  { %365 = vmatpush1.bf16.msra.mxu1 %v529_v56 }
 0x106   :  { %v496_v19 = vpop.f32.mrf.mxu0 }
 0x107   :  { %v170_v20 = vadd.f32 %v496_v19, %v415_v18 }
 0x108   :  { %v164_v21 = vpop.f32.mrf.mxu0 }
 0x109   :  { %v176_v22 = vmul.f32 0.70710677, %v170_v20  ;;  %v165_v23 = vadd.f32 %v415_v18, %v164_v21  ;;  %v174_v31 = vmul.f32 0.5, %v170_v20  ;;  %v261_v18 = vrot.slane %v252_v15, %v260_v16 }
 0x10b   :  { %v175_v24 = vmul.f32 0.70710677, %v165_v23  ;;  %531 = verf.f32 %v176_v22  ;;  %v173_v27 = vmul.f32 0.5, %v165_v23 }
 0x10d   :  { %533 = verf.f32 %v175_v24 }
 0x118   :  { %v532_v25 = vpop.eup %531 }
 0x119   :  { %v180_v30 = vadd.f32 1.0, %v532_v25 }
 0x11a   :  { %v534_v26 = vpop.eup %533 }
 0x11b   :  { %v179_v28 = vadd.f32 1.0, %v534_v26  ;;  %v182_v32 = vmul.f32 %v180_v30, %v174_v31 }
 0x11d   :  { %v181_v29 = vmul.f32 %v179_v28, %v173_v27 }
 0x11f   :  { %183 = vadd.xlane.f32.xlu0 %v181_v29 }
 0x123   :  { %185 = vadd.xlane.f32.xlu0 %v182_v32 }
 0x1a8   :  { %v184_v33 = vpop.xlane.xlu0 %183 }
 0x1a9   :  { %v188_v34 = vmul.f32 0.0078125, %v184_v33 }
 0x1ab   :  { %v190_v35 = vsub.f32 %v181_v29, %v188_v34 }
 0x1ac   :  { %v186_v36 = vpop.xlane.xlu0 %185 }
 0x1ad   :  { %v189_v37 = vmul.f32 0.0078125, %v186_v36  ;;  %v192_v38 = vmul.f32 %v190_v35, %v190_v35 }
 0x1af   :  { %v191_v39 = vsub.f32 %v182_v32, %v189_v37  ;;  %194 = vadd.xlane.f32.xlu1 %v192_v38 }
 0x1b1   :  { %v193_v40 = vmul.f32 %v191_v39, %v191_v39 }
 0x1b3   :  { %196 = vadd.xlane.f32.xlu1 %v193_v40 }
 0x238   :  { %v195_v58 = vpop.xlane.xlu1 %194 }
 0x239   :  { %v198_v59 = vmul.f32 0.0078125, %v195_v58 }
 0x23b   :  { %v200_v60 = vadd.f32 1e-12, %v198_v59 }
 0x23c   :  { %v197_v61 = vpop.xlane.xlu1 %196 }
 0x23d   :  { %535 = vrsqrt.f32 %v200_v60  ;;  %v199_v62 = vmul.f32 0.0078125, %v197_v61 }
 0x23f   :  { %v201_v63 = vadd.f32 1e-12, %v199_v62 }
 0x241   :  { %537 = vrsqrt.f32 %v201_v63 }
 0x24a   :  { %v536_v0 = vpop.eup %535 }
 0x24b   :  { %v204_v1 = vmul.f32 %v536_v0, %v190_v35 }
 0x24d   :  { %v213_v4 = vmul.f32 %v416_v2, %v204_v1 }
 0x24e   :  { %v538_v3 = vpop.eup %537 }
 0x24f   :  { %v205_v5 = vmul.f32 %v538_v3, %v191_v39  ;;  %v222_v8 = vadd.f32 %v417_v6, %v213_v4 }
 0x251   :  { %v214_v7 = vmul.f32 %v416_v2, %v205_v5 }
 0x253   :  { %v223_v9 = vadd.f32 %v417_v6, %v214_v7 }
 0x255   :  { %v442_v10 = vpack.c.bf16 %v223_v9, %v222_v8 }
 0x257   :  { %443 = vst [vmem:[#allocation2] sm:$0xff] %v442_v10  }
 0x25e   :  { %v530_v11 = vld [vmem:[#allocation2] sm:$0xff]  }
 0x25f   :  { %383 = vmatmul.mubr.bf16.vlgmr.msra.gmra.mxu1 %v530_v11 }
 0x31f   :  { %v384_v19 = vpop.f32.mrf.mxu1 }
 0x320   :  { %v385_v20 = vadd.f32 %v384_v19, %v257_v17 }
 0x321   :  { %v386_v21 = vpop.f32.mrf.mxu1 }
 0x322   :  { %393 = vst [vmem:[#allocation9] sm:$0xff] %v385_v20  ;;  %v387_v22 = vadd.f32 %v386_v21, %v261_v18 }
 0x323   :  { %v388_v23 = vpop.f32.mrf.mxu1 }
 0x324   :  { %394 = vst [vmem:[#allocation9 + $0x8] sm:$0xff] %v387_v22  ;;  %v389_v24 = vadd.f32 %v388_v23, %v257_v17 }
 0x325   :  { %v390_v25 = vpop.f32.mrf.mxu1 }
 0x326   :  { %395 = vst [vmem:[#allocation9 + $0x10] sm:$0xff] %v389_v24  ;;  %v391_v26 = vadd.f32 %v390_v25, %v261_v18 }
 0x328   :  { %396 = vst [vmem:[#allocation9 + $0x18] sm:$0xff] %v391_v26 }
 0x329   :  { %610 = shalt.err (!%p607_p5)
}
 0x32a   :  { %s632_s6 = smov 256   ;;  %s633_s23 = smov 16  }
 0x32b   :  { %408 = dma.vmem_to_hbm [thread:$0]  %s403_s4, 512, %s705_s7, [#allocation5], %s632_s6, %s632_s6, %s633_s23  }
 0x32c   :  { %623 = dma.done.wait [#allocation5], 512  }
 0x32d   :  { %624 = vsyncadd [#allocation5], 4294966784 }
 0x32e   :  { %412 = vsyncpa [#allocation4], 1 }
 0x32f   :  { %413 = vsyncpa [#allocation7], 1 }
 0x330   :  { %414 = vsyncpa [#allocation5], 1 }

</bundles_post_ra>
